<compile_context>
chip_gen: v7x
topology: tpu7x:2x2x1
jax: 0.10.0
libtpu: 0.0.40
codegen_flags: <defaults>
</compile_context>

<pallas_src>
import functools

import jax
import jax.numpy as jnp
from jax.experimental import pallas as pl
from jax.experimental.pallas import tpu as pltpu

_LANE = 128
_SUBLANE = 8


def _round_up(v, m):
    return ((v + m - 1) // m) * m


def _cdiv(a, b):
    return -(-a // b)


def _vmem_capacity_bytes():
    try:
        return int(pltpu.get_tpu_info().vmem_capacity_bytes)
    except Exception:
        return 64 << 20  # conservative (v7x-sized) fallback


def _is_multi_tensorcore():
    # v4/v5p megacore and v7x (2 TCs/chip) want >= 2 parallel grid steps.
    try:
        kind = jax.devices()[0].device_kind.lower()
    except Exception:
        return False
    return any(tag in kind for tag in ("v4", "v5p", "v7", "7x"))


def _linear_average_kernel(x_ref, mem_ref, out_ref, *, inv_t, precision):
    # x_ref:   (tm, tk) tile of x
    # mem_ref: (tn, tk) tile of memory rows (possibly bf16)
    # out_ref: (tm, tn) f32 output tile; its index_map ignores k, so it stays
    #          resident in VMEM across the K grid axis -> accumulate in place.
    k = pl.program_id(2)

    @pl.when(k == 0)
    def _():
        out_ref[...] = jnp.zeros_like(out_ref)

    a = x_ref[...]
    b = mem_ref[...]
    if a.dtype != b.dtype:  # e.g. bf16 bank streamed against f32 activations
        common = jnp.promote_types(a.dtype, b.dtype)
        a = a.astype(common)
        b = b.astype(common)

    # Contract the last dim of x with the last dim of memory (x @ memory.T)
    # without materializing a transpose of the memory tile.
    out_ref[...] += jax.lax.dot_general(
        a,
        b,
        dimension_numbers=(((1,), (1,)), ((), ())),
        preferred_element_type=jnp.float32,
        precision=precision,
    )

    @pl.when(k == pl.num_programs(2) - 1)
    def _():
        out_ref[...] *= inv_t


def linear_average_forward(x, memory, T=0.05, *, tm=None, tn=None, tk=None,
                           precision=None):
    """Pallas implementation of LinearAverage.forward (y is unused, as in PyTorch)."""
    B, D = x.shape
    N, D2 = memory.shape
    assert D == D2, "inputSize mismatch between x and memory"

    x_bytes = jnp.dtype(x.dtype).itemsize
    m_bytes = jnp.dtype(memory.dtype).itemsize

    vmem_cap = _vmem_capacity_bytes()
    # ~48 MiB scoped budget on v7x (64 MiB physical), ~96 MiB on v5e/v6e (128 MiB).
    vmem_budget = min((3 * vmem_cap) // 4, 96 << 20)
    multi_tc = _is_multi_tensorcore()

    # --- tk: never pad the persistent bank along K if avoidable --------------
    if tk is None:
        if D <= 2048:
            tk = D  # full-dim block: valid for any D, single K step
        else:
            tk = next((c for c in range(2048, 0, -_LANE) if D % c == 0), 0) or 2048
    k_pad = (D % tk) != 0  # rare fallback; pads x and (unfortunately) the bank

    # --- tm: keep the whole batch resident -> bank streams from HBM once -----
    if tm is None:
        tm = _round_up(B, _SUBLANE)

    # --- tn: ~2 MiB bank tile per grid step (DMA granularity, HBM-bound) -----
    if tn is None:
        tn_target = max(_LANE, ((2 << 20) // (m_bytes * tk)) // _LANE * _LANE)
        tn = N if tn_target >= N else tn_target

    # Double-buffered x / memory / output tiles; no scratch accumulator.
    def _need(tm_, tn_, tk_):
        return 2 * tm_ * tk_ * x_bytes + 2 * tn_ * tk_ * m_bytes + 2 * tm_ * tn_ * 4

    # Over budget: shrink tn first (only hurts granularity), then tm (hurts
    # total HBM traffic), then tn again down to one lane-tile.
    while _need(tm, tn, tk) > vmem_budget and tn > 512:
        tn = max(512, (tn // 2) // _LANE * _LANE)
    while _need(tm, tn, tk) > vmem_budget and tm > 256:
        tm = max(256, _round_up(tm // 2, _SUBLANE))
    while _need(tm, tn, tk) > vmem_budget and tn > _LANE:
        tn = max(_LANE, (tn // 2) // _LANE * _LANE)

    B_pad = _round_up(B, tm)

    # Feed both TensorCores when the grid would otherwise have a single
    # parallel step (multi-TC parts only; on single-TC chips this would just
    # add a grid step for nothing).
    if multi_tc and (B_pad // tm) * _cdiv(N, tn) == 1 and N > _LANE:
        tn = max(_LANE, _round_up(_cdiv(N, 2), _LANE))

    # --- padding: only x (tiny) and, in the rare k_pad fallback, the bank ----
    D_pad = _round_up(D, tk) if k_pad else D
    if (B_pad, D_pad) != (B, D):
        x = jnp.pad(x, ((0, B_pad - B), (0, D_pad - D)))
    if k_pad:
        # Rare path (D > 2048 and no 128-multiple divisor). This re-pads the
        # persistent bank each call; prefer storing the bank K-padded upstream.
        memory = jnp.pad(memory, ((0, 0), (0, D_pad - D)))

    grid = (B_pad // tm, _cdiv(N, tn), D_pad // tk)

    vmem_need = _need(tm, tn, tk)
    vmem_limit = None
    if vmem_need > (16 << 20):
        vmem_limit = int(min(vmem_need + (8 << 20), vmem_budget))

    kernel = functools.partial(
        _linear_average_kernel, inv_t=float(1.0 / T), precision=precision
    )

    out = pl.pallas_call(
        kernel,
        out_shape=jax.ShapeDtypeStruct((B_pad, N), jnp.float32),
        grid_spec=pltpu.PrefetchScalarGridSpec(
            num_scalar_prefetch=0,
            grid=grid,
            in_specs=[
                pl.BlockSpec((tm, tk), lambda i, j, k: (i, k)),   # x tile
                pl.BlockSpec((tn, tk), lambda i, j, k: (j, k)),   # memory tile
            ],
            out_specs=pl.BlockSpec((tm, tn), lambda i, j, k: (i, j)),
        ),
        compiler_params=pltpu.CompilerParams(
            dimension_semantics=("parallel", "parallel", "arbitrary"),
            vmem_limit_bytes=vmem_limit,
        ),
        cost_estimate=pl.CostEstimate(
            flops=2 * B * N * D,
            transcendentals=0,
            bytes_accessed=int(
                x_bytes * B_pad * D_pad
                + m_bytes * N * D_pad * (B_pad // tm)   # bank streamed once per i-step
                + 4 * B_pad * N
            ),
        ),
    )(x, memory)

    if B_pad != B:
        out = out[:B]
    return out


if __name__ == "__main__":
    # Consistent with LinearAverage(inputSize=128, outputSize=256, T=0.05).
    inputSize = 128
    outputSize = 256
    T = 0.05
    batch = 8

    key = jax.random.PRNGKey(0)
    kx, km = jax.random.split(key)

    x = jax.random.normal(kx, (batch, inputSize), dtype=jnp.float32)
    # Buffer is zeros in __init__; use a deterministic row-normalized bank so
    # the matmul is meaningful.
    memory = jax.random.normal(km, (outputSize, inputSize), dtype=jnp.float32)
    memory = memory / jnp.linalg.norm(memory, axis=1, keepdims=True)
    y = jnp.arange(batch, dtype=jnp.int32)  # unused by forward (matches PyTorch)

    out = linear_average_forward(x, memory, T)
    jax.block_until_ready(out)

    ref = jnp.dot(x, memory.T) / T
    assert out.shape == (batch, outputSize)
    assert jnp.allclose(out, ref, atol=1e-3, rtol=1e-3)

    # Ragged / non-128-aligned shapes exercise the no-bank-padding boundary path.
    B2, N2, D2 = 5, 200, 96
    k1, k2 = jax.random.split(km)
    x2 = jax.random.normal(k1, (B2, D2), dtype=jnp.float32)
    mem2 = jax.random.normal(k2, (N2, D2), dtype=jnp.float32)
    out2 = linear_average_forward(x2, mem2, T)
    jax.block_until_ready(out2)
    ref2 = jnp.dot(x2, mem2.T) / T
    assert out2.shape == (B2, N2)
    assert jnp.allclose(out2, ref2, atol=1e-3, rtol=1e-3)

    print("KERNEL_OK")
</pallas_src>

<mosaic_0001>
module attributes {stable_mosaic.version = 11 : i64} {
  func.func @_linear_average_kernel(%arg0: i32, %arg1: i32, %arg2: i32, %arg3: memref<8x128xf32, #tpu.memory_space<vmem>>, %arg4: memref<256x128xf32, #tpu.memory_space<vmem>>, %arg5: memref<8x256xf32, #tpu.memory_space<vmem>>) attributes {dimension_semantics = [#tpu.dimension_semantics<parallel>, #tpu.dimension_semantics<parallel>, #tpu.dimension_semantics<arbitrary>], iteration_bounds = array<i64: 1, 1, 1>, scalar_prefetch = 0 : i64, scratch_operands = 0 : i64, tpu.core_type = #tpu.core_type<tc>, window_params = [{transform_indices = @transform_0, window_bounds = array<i64: 8, 128>}, {transform_indices = @transform_1, window_bounds = array<i64: 256, 128>}, {transform_indices = @transform_2, window_bounds = array<i64: 8, 256>}]} {
    %c0_i32 = arith.constant 0 : i32
    %0 = arith.cmpi eq, %arg2, %c0_i32 : i32
    %1 = arith.extui %0 : i1 to i32
    %c0_i32_0 = arith.constant 0 : i32
    %2 = arith.cmpi ne, %1, %c0_i32_0 : i32
    scf.if %2 {
      %cst_10 = arith.constant 0.000000e+00 : f32
      %12 = vector.broadcast %cst_10 : f32 to vector<8x256xf32>
      %c0_11 = arith.constant 0 : index
      %c0_12 = arith.constant 0 : index
      %13 = vector.load %arg5[%c0_11, %c0_12] : memref<8x256xf32, #tpu.memory_space<vmem>>, vector<8x256xf32>
      tpu.vector_store %arg5[%c0_11, %c0_12], %12 {strides = array<i32>} : memref<8x256xf32, #tpu.memory_space<vmem>>, vector<8x256xf32>,
    } else {
    }
    %c0 = arith.constant 0 : index
    %c0_1 = arith.constant 0 : index
    %3 = vector.load %arg3[%c0, %c0_1] : memref<8x128xf32, #tpu.memory_space<vmem>>, vector<8x128xf32>
    %c0_2 = arith.constant 0 : index
    %c0_3 = arith.constant 0 : index
    %4 = vector.load %arg4[%c0_2, %c0_3] : memref<256x128xf32, #tpu.memory_space<vmem>>, vector<256x128xf32>
    %c0_4 = arith.constant 0 : index
    %c0_5 = arith.constant 0 : index
    %5 = vector.load %arg5[%c0_4, %c0_5] : memref<8x256xf32, #tpu.memory_space<vmem>>, vector<8x256xf32>
    %cst = arith.constant dense<0.000000e+00> : vector<8x256xf32>
    %6 = tpu.matmul %3, %4, %cst {dimension_numbers = #tpu.dot_dimension_numbers<[1], [1], [0], [0], [0, 0, 1, 0], [], []>} : vector<8x128xf32>, vector<256x128xf32>, vector<8x256xf32> -> vector<8x256xf32>
    %7 = arith.addf %5, %6 : vector<8x256xf32>
    %c0_6 = arith.constant 0 : index
    %c0_7 = arith.constant 0 : index
    %8 = vector.load %arg5[%c0_6, %c0_7] : memref<8x256xf32, #tpu.memory_space<vmem>>, vector<8x256xf32>
    tpu.vector_store %arg5[%c0_6, %c0_7], %7 {strides = array<i32>} : memref<8x256xf32, #tpu.memory_space<vmem>>, vector<8x256xf32>,
    %c0_i32_8 = arith.constant 0 : i32
    %9 = arith.cmpi eq, %arg2, %c0_i32_8 : i32
    %10 = arith.extui %9 : i1 to i32
    %c0_i32_9 = arith.constant 0 : i32
    %11 = arith.cmpi ne, %10, %c0_i32_9 : i32
    scf.if %11 {
      %c0_10 = arith.constant 0 : index
      %c0_11 = arith.constant 0 : index
      %12 = vector.load %arg5[%c0_10, %c0_11] : memref<8x256xf32, #tpu.memory_space<vmem>>, vector<8x256xf32>
      %cst_12 = arith.constant 2.000000e+01 : f32
      %13 = vector.broadcast %cst_12 : f32 to vector<8x256xf32>
      %14 = arith.mulf %12, %13 : vector<8x256xf32>
      %c0_13 = arith.constant 0 : index
      %c0_14 = arith.constant 0 : index
      %15 = vector.load %arg5[%c0_13, %c0_14] : memref<8x256xf32, #tpu.memory_space<vmem>>, vector<8x256xf32>
      tpu.vector_store %arg5[%c0_13, %c0_14], %14 {strides = array<i32>} : memref<8x256xf32, #tpu.memory_space<vmem>>, vector<8x256xf32>,
    } else {
    }
    return
  }
  func.func @transform_0(%arg0: i32, %arg1: i32, %arg2: i32) -> (i32, i32) {
    %c0_i32 = arith.constant 0 : i32
    return %arg0, %arg2 : i32, i32
  }
  func.func @transform_1(%arg0: i32, %arg1: i32, %arg2: i32) -> (i32, i32) {
    %c0_i32 = arith.constant 0 : i32
    return %arg1, %arg2 : i32, i32
  }
  func.func @transform_2(%arg0: i32, %arg1: i32, %arg2: i32) -> (i32, i32) {
    %c0_i32 = arith.constant 0 : i32
    return %arg0, %arg1 : i32, i32
  }
}

</mosaic_0001>

<bundles_post_ra>
// kernel: tpu_custom_call.1
= control target key start
LH: loop header
LB: loop body
LE: loop exit
PB: predicated region body
PF: predicated region fallthrough
CT: control target
= control target key end

     0   :  { %7 = vsyncpa [#allocation3], 0  ;;  %s386_s0 = inlined_call_operand.hbm [shape: f32[8,128], index: 0, kind: input, shape index: {}]   ;;  %s387_s1 = inlined_call_operand.hbm [shape: f32[256,128], index: 1, kind: input, shape index: {}]   ;;  %s388_s2 = inlined_call_operand.hbm [shape: f32[8,256], index: 2, kind: output, shape index: {}]  }
   0x1   :  { %8 = vsyncpa [#allocation6], 0 }
   0x2   :  { %9 = vsyncpa [#allocation4], 0  ;;  %s323_s9 = smov [#allocation2]   ;;  %s324_s11 = smov [#allocation5]  }
   0x3   :  { %s16_s10 = sshll.u32 %s323_s9, 4  ;;  %s25_s12 = sshll.u32 %s324_s11, 4  ;;  %s17_s10 = int_to_ptr.vmem [resolvable:$true] %s16_s10  ;;  %s343_s12 = int_to_ptr.vmem [resolvable:$true] %s25_s12 }
   0x4   :  { %s251_s15 = scalar_lea.hbm %s386_s0, 128 }
   0x5   :  { %p252_p0 = scmp.ne.s32.totalorder %s386_s0, %s251_s15  ;;  %p255_p1 = scmp.lt.u32.totalorder %s251_s15, %s386_s0 }
   0x7   :  { %p257_p2 = pnand %p255_p1, %p252_p0 }
   0x9   :  { %260 = shalt.err (!%p257_p2)
}
   0xa   :  { %s261_s20 = scalar_lea.vmem %s17_s10, 128  ;;  %p266_p4 = scmp.lt.s32.totalorder %s17_s10, %s17_s10 }
   0xb   :  { %p262_p3 = scmp.ne.s32.totalorder %s17_s10, %s261_s20  ;;  %p267_p5 = scmp.lt.s32.totalorder %s261_s20, %s261_s20 }
   0xd   :  { %p268_p6 = por %p267_p5, %p266_p4 }
   0xf   :  { %p269_p7 = pnand %p268_p6, %p262_p3 }
  0x11   :  { %272 = shalt.err (!%p269_p7)
}
  0x12   :  { %19 = dma.hbm_to_vmem [thread:$0]  %s386_s0, 128, %s17_s10, [#allocation3]  }
  0x13   :  { %s273_s25 = scalar_lea.hbm %s387_s1, 4096 }
  0x14   :  { %p274_p8 = scmp.ne.s32.totalorder %s387_s1, %s273_s25  ;;  %p277_p9 = scmp.lt.u32.totalorder %s273_s25, %s387_s1 }
  0x16   :  { %p279_p10 = pnand %p277_p9, %p274_p8 }
  0x18   :  { %282 = shalt.err (!%p279_p10)
}
  0x19   :  { %s283_s30 = scalar_lea.vmem %s343_s12, 4096  ;;  %p288_p12 = scmp.lt.s32.totalorder %s343_s12, %s343_s12 }
  0x1a   :  { %p284_p11 = scmp.ne.s32.totalorder %s343_s12, %s283_s30  ;;  %p289_p13 = scmp.lt.s32.totalorder %s283_s30, %s283_s30 }
  0x1c   :  { %p290_p0 = por %p289_p13, %p288_p12 }
  0x1e   :  { %p291_p1 = pnand %p290_p0, %p284_p11 }
  0x20   :  { %294 = shalt.err (!%p291_p1)
}
  0x21   :  { %s325_s0 = smov 128   ;;  %s326_s3 = smov 8  }
  0x22   :  { %31 = dma.hbm_to_vmem [thread:$0]  %s387_s1, 4096, %s343_s12, [#allocation6], %s325_s0, %s325_s0, %s326_s3  }
  0x23   :  { %317 = dma.done.wait [#allocation3], 128  }
  0x24   :  { %318 = vsyncadd [#allocation3], 4294967168 }
  0x25   :  { %319 = dma.done.wait [#allocation6], 4096  }
  0x26   :  { %320 = vsyncadd [#allocation6], 4294963200  ;;  %v61_v0 = vld [vmem:[#allocation5 + $0x80] sm:$0xff]  ;;  %v62_v1 = vld [vmem:[#allocation5 + $0x88] sm:$0xff]  ;;  %s327_s1 = smov [#allocation7]  }
  0x27   :  { %v45_v2 = vld [vmem:[#allocation5] sm:$0xff]  ;;  %v213_v3 = vpack.c.bf16 %v62_v1, %v61_v0  ;;  %v46_v4 = vld [vmem:[#allocation5 + $0x8] sm:$0xff]  ;;  %v63_v5 = vld [vmem:[#allocation5 + $0x90] sm:$0xff]  ;;  %s169_s6 = sshll.u32 %s327_s1, 4  ;;  %s170_s6 = int_to_ptr.vmem [resolvable:$true] %s169_s6 }
  0x28   :  { %v64_v6 = vld [vmem:[#allocation5 + $0x98] sm:$0xff]  ;;  %v215_v7 = vpack.c.bf16 %v46_v4, %v45_v2  ;;  %v47_v9 = vld [vmem:[#allocation5 + $0x10] sm:$0xff]  ;;  %v65_v11 = vld [vmem:[#allocation5 + $0xa0] sm:$0xff]  ;;  %s295_s7 = scalar_lea.vmem %s170_s6, 256  ;;  %p300_p3 = scmp.lt.s32.totalorder %s170_s6, %s170_s6 }
  0x29   :  { %v217_v8 = vpack.c.bf16 %v64_v6, %v63_v5  ;;  %214 = vmatprep.subr.bf16.mxu0 %v213_v3  ;;  %v48_v10 = vld [vmem:[#allocation5 + $0x18] sm:$0xff]  ;;  %v66_v12 = vld [vmem:[#allocation5 + $0xa8] sm:$0xff]  ;;  %v49_v16 = vld [vmem:[#allocation5 + $0x20] sm:$0xff]  ;;  %p296_p2 = scmp.ne.s32.totalorder %s170_s6, %s295_s7  ;;  %p301_p4 = scmp.lt.s32.totalorder %s295_s7, %s295_s7 }
  0x2a   :  { %216 = vmatpush3.bf16.xpose.msra.mxu0 %v215_v7  ;;  %v219_v13 = vpack.c.bf16 %v48_v10, %v47_v9  ;;  %v221_v14 = vpack.c.bf16 %v66_v12, %v65_v11  ;;  %v44_v15 = vld [vmem:[#allocation2] sm:$0xff]  ;;  %v50_v17 = vld [vmem:[#allocation5 + $0x28] sm:$0xff]  ;;  %v67_v18 = vld [vmem:[#allocation5 + $0xb0] sm:$0xff] }
  0x2b   :  { %218 = vmatprep.subr.bf16.mxu0 %v217_v8  ;;  %211 = vmatprep.mubr.f32.mxu0 %v44_v15  ;;  %v68_v19 = vld [vmem:[#allocation5 + $0xb8] sm:$0xff]  ;;  %v223_v20 = vpack.c.bf16 %v50_v17, %v49_v16  ;;  %v51_v22 = vld [vmem:[#allocation5 + $0x30] sm:$0xff]  ;;  %v69_v24 = vld [vmem:[#allocation5 + $0xc0] sm:$0xff]  ;;  %p302_p5 = por %p301_p4, %p300_p3 }
  0x2c   :  { %v225_v21 = vpack.c.bf16 %v68_v19, %v67_v18  ;;  %v52_v23 = vld [vmem:[#allocation5 + $0x38] sm:$0xff]  ;;  %v70_v25 = vld [vmem:[#allocation5 + $0xc8] sm:$0xff]  ;;  %v53_v28 = vld [vmem:[#allocation5 + $0x40] sm:$0xff] }
  0x2d   :  { %v227_v26 = vpack.c.bf16 %v52_v23, %v51_v22  ;;  %v229_v27 = vpack.c.bf16 %v70_v25, %v69_v24  ;;  %v54_v29 = vld [vmem:[#allocation5 + $0x48] sm:$0xff]  ;;  %v71_v30 = vld [vmem:[#allocation5 + $0xd0] sm:$0xff]  ;;  %v72_v31 = vld [vmem:[#allocation5 + $0xd8] sm:$0xff]  ;;  %p303_p6 = pnand %p302_p5, %p296_p2 }
  0x2e   :  { %v231_v32 = vpack.c.bf16 %v54_v29, %v53_v28  ;;  %v233_v33 = vpack.c.bf16 %v72_v31, %v71_v30  ;;  %v55_v34 = vld [vmem:[#allocation5 + $0x50] sm:$0xff]  ;;  %v56_v35 = vld [vmem:[#allocation5 + $0x58] sm:$0xff]  ;;  %v73_v36 = vld [vmem:[#allocation5 + $0xe0] sm:$0xff] }
  0x2f   :  { %v74_v37 = vld [vmem:[#allocation5 + $0xe8] sm:$0xff]  ;;  %v235_v38 = vpack.c.bf16 %v56_v35, %v55_v34  ;;  %v57_v40 = vld [vmem:[#allocation5 + $0x60] sm:$0xff]  ;;  %v75_v42 = vld [vmem:[#allocation5 + $0xf0] sm:$0xff] }
  0x30   :  { %v237_v39 = vpack.c.bf16 %v74_v37, %v73_v36  ;;  %v58_v41 = vld [vmem:[#allocation5 + $0x68] sm:$0xff]  ;;  %v76_v43 = vld [vmem:[#allocation5 + $0xf8] sm:$0xff]  ;;  %v59_v46 = vld [vmem:[#allocation5 + $0x70] sm:$0xff] }
  0x31   :  { %v239_v44 = vpack.c.bf16 %v58_v41, %v57_v40  ;;  %v241_v45 = vpack.c.bf16 %v76_v43, %v75_v42  ;;  %v60_v47 = vld [vmem:[#allocation5 + $0x78] sm:$0xff] }
  0x32   :  { %220 = vmatpush3.bf16.xpose.msra.mxu0 %v219_v13  ;;  %v243_v48 = vpack.c.bf16 %v60_v47, %v59_v46 }
  0x33   :  { %222 = vmatprep.subr.bf16.mxu0 %v221_v14 }
  0x3a   :  { %224 = vmatpush3.bf16.xpose.msra.mxu0 %v223_v20 }
  0x3b   :  { %226 = vmatprep.subr.bf16.mxu0 %v225_v21 }
  0x42   :  { %228 = vmatpush3.bf16.xpose.msra.mxu0 %v227_v26 }
  0x43   :  { %230 = vmatprep.subr.bf16.mxu0 %v229_v27 }
  0x4a   :  { %232 = vmatpush3.bf16.xpose.msra.mxu0 %v231_v32 }
  0x4b   :  { %234 = vmatprep.subr.bf16.mxu0 %v233_v33 }
  0x52   :  { %236 = vmatpush3.bf16.xpose.msra.mxu0 %v235_v38 }
  0x53   :  { %238 = vmatprep.subr.bf16.mxu0 %v237_v39 }
  0x5a   :  { %240 = vmatpush3.bf16.xpose.msra.mxu0 %v239_v44 }
  0x5b   :  { %242 = vmatprep.subr.bf16.mxu0 %v241_v45 }
  0x62   :  { %244 = vmatpush3.bf16.xpose.msra.mxu0 %v243_v48 }
  0x69   :  { %212 = vmatmul.mubr.f32.vlgmr.msra.gmra.mrb[0].mxu0 %v44_v15 }
 0x13c   :  { %v145_v49 = vpop.f32.mrb[0].mxu0 }
 0x13d   :  { %v147_v50 = vpop.f32.mrb[1].mxu0  ;;  %v159_v51 = vmul.f32 20.0, %v145_v49 }
 0x13e   :  { %v160_v52 = vmul.f32 20.0, %v147_v50 }
 0x13f   :  { %161 = vst [vmem:[#allocation7] sm:$0xff] %v159_v51 }
 0x140   :  { %162 = vst [vmem:[#allocation7 + $0x8] sm:$0xff] %v160_v52 }
 0x141   :  { %306 = shalt.err (!%p303_p6)
}
 0x142   :  { %s307_s10 = scalar_lea.hbm %s388_s2, 256 }
 0x143   :  { %p308_p7 = scmp.ne.s32.totalorder %s388_s2, %s307_s10  ;;  %p311_p8 = scmp.lt.u32.totalorder %s307_s10, %s388_s2 }
 0x145   :  { %p313_p9 = pnand %p311_p8, %p308_p7 }
 0x147   :  { %316 = shalt.err (!%p313_p9)
}
 0x148   :  { %172 = dma.vmem_to_hbm [thread:$0]  %s170_s6, 256, %s388_s2, [#allocation4]  }
 0x149   :  { %321 = dma.done.wait [#allocation4], 256  }
 0x14a   :  { %322 = vsyncadd [#allocation4], 4294967040 }
 0x14b   :  { %176 = vsyncpa [#allocation3], 1 }
 0x14c   :  { %177 = vsyncpa [#allocation6], 1 }
 0x14d   :  { %178 = vsyncpa [#allocation4], 1 }

</bundles_post_ra>
